<compile_context>
chip_gen: v7x
topology: tpu7x:2x2x1
jax: 0.10.0
libtpu: 0.0.40
codegen_flags: <defaults>
</compile_context>

<pallas_src>
import jax
import jax.numpy as jnp
from jax.experimental import pallas as pl
from jax.experimental.pallas import tpu as pltpu


# Set to jnp.bfloat16 on v6e/v7x for ~2x MXU rate (f32 accumulation is kept either
# way via preferred_element_type).  Kept f32 here for exact parity with the f32
# PyTorch reference module.
_MATMUL_DTYPE = jnp.float32


def _round_up(x, m):
    return (x + m - 1) // m * m


# ---------------------------------------------------------------------------
# Fused kernel: im2col conv (all filter banks) + bias + ReLU + masked global
# max-pool + concat (implicit via stacked banks) + final FC, one grid step per
# batch tile.
# ---------------------------------------------------------------------------
def _textcnn_fused_kernel(emb_ref, w_ref, b_ref, mask_ref, fcw_ref, fcb_ref, out_ref):
    emb = emb_ref[...]                        # (tb, L_pad, E) f32
    tb, _, E = emb.shape
    w_all = w_ref[...]                        # (max_fs*E, NF_total) f32
    max_fs = w_all.shape[0] // E
    l_out_pad, nf_total = mask_ref.shape

    # im2col: slab[b, t, s*E + e] = emb[b, t + s, e]   (static slices + lane concat)
    cols = [emb[:, s:s + l_out_pad, :] for s in range(max_fs)]
    slab = jnp.concatenate(cols, axis=-1)                      # (tb, l_out_pad, max_fs*E)
    slab = slab.reshape(tb * l_out_pad, max_fs * E)            # 2-D: M = tb*l_out_pad, K = max_fs*E

    # One MXU matmul for all filter banks (K up to 128, N = 3*NF).
    scores = jnp.dot(slab.astype(_MATMUL_DTYPE), w_all.astype(_MATMUL_DTYPE),
                     preferred_element_type=jnp.float32)       # (M, NF_total) f32
    scores = jnp.maximum(scores + b_ref[...], 0.0)             # bias + ReLU

    # Zero out conv positions that are out of range for each filter size
    # (exact: ReLU output >= 0, so the max over valid positions is unchanged),
    # then global max-pool over positions.
    scores = scores.reshape(tb, l_out_pad, nf_total) * mask_ref[...][None, :, :]
    pooled = jnp.max(scores, axis=1)                           # (tb, NF_total)

    # Final fully-connected layer; output padded to 128 lanes -> dense store.
    logits = jnp.dot(pooled.astype(_MATMUL_DTYPE), fcw_ref[...].astype(_MATMUL_DTYPE),
                     preferred_element_type=jnp.float32) + fcb_ref[...]
    out_ref[...] = logits.reshape(tb, 1, logits.shape[-1])


def textcnn_fused(emb_pad, packed, batch_block=None):
    B, L_pad, E = emb_pad.shape
    w_all, b_all = packed["w_all"], packed["b_all"]
    pos_mask, fc_w, fc_b = packed["pos_mask"], packed["fc_w"], packed["fc_b"]
    max_fs, l_out_pad = packed["max_fs"], packed["l_out_pad"]
    nf_total = w_all.shape[-1]
    c_pad = fc_w.shape[-1]

    if batch_block is None:
        # Small batches: one batch row per grid step so the ("parallel",) axis can be
        # split across both TensorCores on v7x.  Larger batches: 8-row tiles to
        # amortize per-step overhead while still giving plenty of parallel steps.
        # (Per-tile VMEM footprint is tiny, so this also fits v7x's 64 MiB VMEM.)
        batch_block = 1 if B <= 8 else 8
    tb = min(batch_block, B)
    grid = (pl.cdiv(B, tb),)

    out = pl.pallas_call(
        _textcnn_fused_kernel,
        out_shape=jax.ShapeDtypeStruct((B, 1, c_pad), jnp.float32),
        grid=grid,
        in_specs=[
            pl.BlockSpec((tb, L_pad, E), lambda i: (i, 0, 0)),          # activations: tiled over batch
            pl.BlockSpec((max_fs * E, nf_total), lambda i: (0, 0)),     # stacked conv weights (DMA'd once)
            pl.BlockSpec((1, nf_total), lambda i: (0, 0)),              # stacked conv bias
            pl.BlockSpec((l_out_pad, nf_total), lambda i: (0, 0)),      # valid-position mask
            pl.BlockSpec((nf_total, c_pad), lambda i: (0, 0)),          # fc weight (lane-padded)
            pl.BlockSpec((1, c_pad), lambda i: (0, 0)),                 # fc bias (lane-padded)
        ],
        out_specs=pl.BlockSpec((tb, 1, c_pad), lambda i: (i, 0, 0)),
        compiler_params=pltpu.CompilerParams(dimension_semantics=("parallel",)),
    )(emb_pad, w_all, b_all, pos_mask, fc_w, fc_b)
    return out[:, 0, :]                                                 # (B, c_pad)


# ---------------------------------------------------------------------------
# Parameter init (deterministic, shapes mirror the PyTorch module's __init__).
# ---------------------------------------------------------------------------
def init_params(key, vocab_size, embedding_dim, num_classes, num_filters, filter_sizes):
    n_fs = len(filter_sizes)
    keys = jax.random.split(key, 3 + 2 * n_fs)
    params = {
        "filter_sizes": tuple(filter_sizes),
        # nn.Embedding(vocab_size, embedding_dim)
        "embedding": 0.1 * jax.random.normal(
            keys[0], (vocab_size, embedding_dim), jnp.float32),
        # nn.Linear(num_filters * len(filter_sizes), num_classes), stored as (in, out)
        "fc_w": 0.1 * jax.random.normal(
            keys[1], (num_filters * n_fs, num_classes), jnp.float32),
        "fc_b": 0.01 * jax.random.normal(keys[2], (1, num_classes), jnp.float32),
        "conv_w": [],
        "conv_b": [],
    }
    for i, fs in enumerate(filter_sizes):
        # nn.Conv2d(1, num_filters, (fs, embedding_dim)) weight (NF,1,fs,E) -> (fs, E, NF)
        params["conv_w"].append(
            0.1 * jax.random.normal(
                keys[3 + 2 * i], (fs, embedding_dim, num_filters), jnp.float32))
        params["conv_b"].append(
            0.01 * jax.random.normal(
                keys[4 + 2 * i], (1, num_filters), jnp.float32))
    return params


# ---------------------------------------------------------------------------
# One-time layout packing for the fused kernel (pure layout plumbing, no compute
# semantics change): stack filter banks along the channel axis, zero-pad short
# filters along the tap axis, build the valid-position mask, pad FC to 128 lanes.
# ---------------------------------------------------------------------------
def pack_params(params, seq_len):
    filter_sizes = params["filter_sizes"]
    max_fs, min_fs = max(filter_sizes), min(filter_sizes)
    E = params["embedding"].shape[1]
    NF = params["conv_w"][0].shape[-1]

    l_out_pad = _round_up(seq_len - min_fs + 1, 8)      # full sublanes for ReLU/max
    L_pad = _round_up(l_out_pad + max_fs - 1, 8)        # padded activation length

    w_cols, b_cols, mask_cols = [], [], []
    for fs, w, b in zip(filter_sizes, params["conv_w"], params["conv_b"]):
        w_pad = jnp.pad(w, ((0, max_fs - fs), (0, 0), (0, 0)))          # (max_fs, E, NF)
        w_cols.append(w_pad.reshape(max_fs * E, NF))
        b_cols.append(b)
        l_out = seq_len - fs + 1
        valid = (jnp.arange(l_out_pad) < l_out).astype(jnp.float32)     # (l_out_pad,)
        mask_cols.append(jnp.broadcast_to(valid[:, None], (l_out_pad, NF)))

    w_all = jnp.concatenate(w_cols, axis=1)              # (max_fs*E, 3*NF)
    b_all = jnp.concatenate(b_cols, axis=1)              # (1, 3*NF)
    pos_mask = jnp.concatenate(mask_cols, axis=1)        # (l_out_pad, 3*NF)

    num_classes = params["fc_w"].shape[1]
    c_pad = _round_up(num_classes, 128)                  # lane-dense output store
    fc_w = jnp.pad(params["fc_w"], ((0, 0), (0, c_pad - num_classes)))
    fc_b = jnp.pad(params["fc_b"], ((0, 0), (0, c_pad - num_classes)))

    return {
        "embedding": params["embedding"],
        "w_all": w_all, "b_all": b_all, "pos_mask": pos_mask,
        "fc_w": fc_w, "fc_b": fc_b,
        "seq_len": seq_len, "L_pad": L_pad, "l_out_pad": l_out_pad,
        "max_fs": max_fs, "num_classes": num_classes,
    }


# ---------------------------------------------------------------------------
# Forward pass (mirrors CNN.forward).
# ---------------------------------------------------------------------------
def cnn_forward(packed, x_tokens):
    B, L = x_tokens.shape
    assert L == packed["seq_len"], (L, packed["seq_len"])
    # Embedding lookup kept in JAX glue: (B, L) int -> (B, L, E) f32.
    # TODO(synk): fold the gather into the kernel via PrefetchScalarGridSpec row-gather.
    emb = jnp.take(packed["embedding"], x_tokens, axis=0).astype(jnp.float32)
    emb_pad = jnp.pad(emb, ((0, 0), (0, packed["L_pad"] - L), (0, 0)))
    logits_pad = textcnn_fused(emb_pad, packed)          # (B, c_pad)
    # nn.Dropout is the identity in eval()/inference mode, which is what we model.
    # TODO(synk): training-mode stochastic dropout (pltpu.prng_*) not implemented.
    return logits_pad[:, :packed["num_classes"]]


if __name__ == "__main__":
    # Small, module-consistent shapes.
    vocab_size = 50
    embedding_dim = 32
    num_classes = 4
    dropout = 0.5            # unused at inference
    num_filters = 8
    filter_sizes = (2, 3, 4)
    batch = 2
    seq_len = 16

    key = jax.random.PRNGKey(0)
    pkey, xkey = jax.random.split(key)
    params = init_params(pkey, vocab_size, embedding_dim, num_classes,
                         num_filters, filter_sizes)
    packed = pack_params(params, seq_len)
    x = jax.random.randint(xkey, (batch, seq_len), 0, vocab_size, dtype=jnp.int32)

    out = cnn_forward(packed, x)
    out = jax.block_until_ready(out)
    assert out.shape == (batch, num_classes), out.shape
    assert bool(jnp.all(jnp.isfinite(out)))
    print("KERNEL_OK")
</pallas_src>

<mosaic_0001>
module attributes {stable_mosaic.version = 11 : i64} {
  func.func @_textcnn_fused_kernel(%arg0: i32, %arg1: memref<1x24x32xf32, #tpu.memory_space<vmem>>, %arg2: memref<128x24xf32, #tpu.memory_space<vmem>>, %arg3: memref<1x24xf32, #tpu.memory_space<vmem>>, %arg4: memref<16x24xf32, #tpu.memory_space<vmem>>, %arg5: memref<24x128xf32, #tpu.memory_space<vmem>>, %arg6: memref<1x128xf32, #tpu.memory_space<vmem>>, %arg7: memref<1x1x128xf32, #tpu.memory_space<vmem>>) attributes {dimension_semantics = [#tpu.dimension_semantics<parallel>], iteration_bounds = array<i64: 2>, scalar_prefetch = 0 : i64, scratch_operands = 0 : i64, tpu.core_type = #tpu.core_type<tc>, window_params = [{transform_indices = @transform_0, window_bounds = array<i64: 1, 24, 32>}, {pipeline_mode = #tpu.pipeline_mode<synchronous>, transform_indices = @transform_1, window_bounds = array<i64: 128, 24>}, {pipeline_mode = #tpu.pipeline_mode<synchronous>, transform_indices = @transform_2, window_bounds = array<i64: 1, 24>}, {pipeline_mode = #tpu.pipeline_mode<synchronous>, transform_indices = @transform_3, window_bounds = array<i64: 16, 24>}, {pipeline_mode = #tpu.pipeline_mode<synchronous>, transform_indices = @transform_4, window_bounds = array<i64: 24, 128>}, {pipeline_mode = #tpu.pipeline_mode<synchronous>, transform_indices = @transform_5, window_bounds = array<i64: 1, 128>}, {transform_indices = @transform_6, window_bounds = array<i64: 1, 1, 128>}]} {
    %c0 = arith.constant 0 : index
    %c0_0 = arith.constant 0 : index
    %c0_1 = arith.constant 0 : index
    %0 = vector.load %arg1[%c0, %c0_0, %c0_1] : memref<1x24x32xf32, #tpu.memory_space<vmem>>, vector<1x24x32xf32>
    %c0_2 = arith.constant 0 : index
    %c0_3 = arith.constant 0 : index
    %1 = vector.load %arg2[%c0_2, %c0_3] : memref<128x24xf32, #tpu.memory_space<vmem>>, vector<128x24xf32>
    %2 = vector.extract_strided_slice %0 {offsets = [0, 0, 0], sizes = [1, 16, 32], strides = [1, 1, 1]} : vector<1x24x32xf32> to vector<1x16x32xf32>
    %3 = vector.extract_strided_slice %0 {offsets = [0, 1, 0], sizes = [1, 16, 32], strides = [1, 1, 1]} : vector<1x24x32xf32> to vector<1x16x32xf32>
    %4 = vector.extract_strided_slice %0 {offsets = [0, 2, 0], sizes = [1, 16, 32], strides = [1, 1, 1]} : vector<1x24x32xf32> to vector<1x16x32xf32>
    %5 = vector.extract_strided_slice %0 {offsets = [0, 3, 0], sizes = [1, 16, 32], strides = [1, 1, 1]} : vector<1x24x32xf32> to vector<1x16x32xf32>
    %6 = tpu.concatenate %2, %3, %4, %5 in 2 : vector<1x16x32xf32>, vector<1x16x32xf32>, vector<1x16x32xf32>, vector<1x16x32xf32> -> vector<1x16x128xf32>
    %7 = vector.shape_cast %6 : vector<1x16x128xf32> to vector<16x128xf32>
    %cst = arith.constant dense<0.000000e+00> : vector<16x24xf32>
    %8 = tpu.matmul %7, %1, %cst {dimension_numbers = #tpu.dot_dimension_numbers<[1], [0], [0], [1], [0, 0, 1, 1], [], []>} : vector<16x128xf32>, vector<128x24xf32>, vector<16x24xf32> -> vector<16x24xf32>
    %c0_4 = arith.constant 0 : index
    %c0_5 = arith.constant 0 : index
    %9 = vector.load %arg3[%c0_4, %c0_5] : memref<1x24xf32, #tpu.memory_space<vmem>>, vector<1x24xf32>
    %10 = vector.broadcast %9 : vector<1x24xf32> to vector<16x24xf32>
    %11 = arith.addf %8, %10 : vector<16x24xf32>
    %cst_6 = arith.constant 0.000000e+00 : f32
    %12 = vector.broadcast %cst_6 : f32 to vector<16x24xf32>
    %13 = arith.maximumf %11, %12 : vector<16x24xf32>
    %14 = vector.shape_cast %13 : vector<16x24xf32> to vector<1x16x24xf32>
    %c0_7 = arith.constant 0 : index
    %c0_8 = arith.constant 0 : index
    %15 = vector.load %arg4[%c0_7, %c0_8] : memref<16x24xf32, #tpu.memory_space<vmem>>, vector<16x24xf32>
    %16 = vector.shape_cast %15 : vector<16x24xf32> to vector<1x16x24xf32>
    %17 = arith.mulf %14, %16 : vector<1x16x24xf32>
    %cst_9 = arith.constant dense<0xFF800000> : vector<1x24xf32>
    %18 = vector.multi_reduction <maximumf>, %17, %cst_9 [1] : vector<1x16x24xf32> to vector<1x24xf32>
    %c0_10 = arith.constant 0 : index
    %c0_11 = arith.constant 0 : index
    %19 = vector.load %arg5[%c0_10, %c0_11] : memref<24x128xf32, #tpu.memory_space<vmem>>, vector<24x128xf32>
    %cst_12 = arith.constant dense<0.000000e+00> : vector<1x128xf32>
    %20 = tpu.matmul %18, %19, %cst_12 {dimension_numbers = #tpu.dot_dimension_numbers<[1], [0], [0], [1], [0, 0, 1, 1], [], []>} : vector<1x24xf32>, vector<24x128xf32>, vector<1x128xf32> -> vector<1x128xf32>
    %c0_13 = arith.constant 0 : index
    %c0_14 = arith.constant 0 : index
    %21 = vector.load %arg6[%c0_13, %c0_14] : memref<1x128xf32, #tpu.memory_space<vmem>>, vector<1x128xf32>
    %22 = arith.addf %20, %21 : vector<1x128xf32>
    %23 = vector.shape_cast %22 : vector<1x128xf32> to vector<1x1x128xf32>
    %c0_15 = arith.constant 0 : index
    %c0_16 = arith.constant 0 : index
    %c0_17 = arith.constant 0 : index
    %24 = vector.load %arg7[%c0_15, %c0_16, %c0_17] : memref<1x1x128xf32, #tpu.memory_space<vmem>>, vector<1x1x128xf32>
    tpu.vector_store %arg7[%c0_15, %c0_16, %c0_17], %23 {strides = array<i32>} : memref<1x1x128xf32, #tpu.memory_space<vmem>>, vector<1x1x128xf32>,
    return
  }
  func.func @transform_0(%arg0: i32) -> (i32, i32, i32) {
    %c0_i32 = arith.constant 0 : i32
    %c0_i32_0 = arith.constant 0 : i32
    %c0_i32_1 = arith.constant 0 : i32
    return %arg0, %c0_i32, %c0_i32_0 : i32, i32, i32
  }
  func.func @transform_1(%arg0: i32) -> (i32, i32) {
    %c0_i32 = arith.constant 0 : i32
    %c0_i32_0 = arith.constant 0 : i32
    %c0_i32_1 = arith.constant 0 : i32
    return %c0_i32, %c0_i32_0 : i32, i32
  }
  func.func @transform_2(%arg0: i32) -> (i32, i32) {
    %c0_i32 = arith.constant 0 : i32
    %c0_i32_0 = arith.constant 0 : i32
    %c0_i32_1 = arith.constant 0 : i32
    return %c0_i32, %c0_i32_0 : i32, i32
  }
  func.func @transform_3(%arg0: i32) -> (i32, i32) {
    %c0_i32 = arith.constant 0 : i32
    %c0_i32_0 = arith.constant 0 : i32
    %c0_i32_1 = arith.constant 0 : i32
    return %c0_i32, %c0_i32_0 : i32, i32
  }
  func.func @transform_4(%arg0: i32) -> (i32, i32) {
    %c0_i32 = arith.constant 0 : i32
    %c0_i32_0 = arith.constant 0 : i32
    %c0_i32_1 = arith.constant 0 : i32
    return %c0_i32, %c0_i32_0 : i32, i32
  }
  func.func @transform_5(%arg0: i32) -> (i32, i32) {
    %c0_i32 = arith.constant 0 : i32
    %c0_i32_0 = arith.constant 0 : i32
    %c0_i32_1 = arith.constant 0 : i32
    return %c0_i32, %c0_i32_0 : i32, i32
  }
  func.func @transform_6(%arg0: i32) -> (i32, i32, i32) {
    %c0_i32 = arith.constant 0 : i32
    %c0_i32_0 = arith.constant 0 : i32
    %c0_i32_1 = arith.constant 0 : i32
    return %arg0, %c0_i32, %c0_i32_0 : i32, i32, i32
  }
}

</mosaic_0001>

<bundles_post_ra>
// kernel: tpu_custom_call.1
= control target key start
LH: loop header
LB: loop body
LE: loop exit
PB: predicated region body
PF: predicated region fallthrough
CT: control target
= control target key end

     0   :  { %11 = vsyncpa [#allocation3], 0  ;;  %s1023_s0 = inlined_call_operand.vmem [shape: f32[2,24,32], index: 0, kind: input, shape index: {}]   ;;  %s1024_s1 = inlined_call_operand.vmem [shape: f32[128,24], index: 1, kind: input, shape index: {}]   ;;  %s1025_s2 = inlined_call_operand.vmem [shape: f32[1,24], index: 2, kind: input, shape index: {}]   ;;  %s1026_s3 = inlined_call_operand.vmem [shape: f32[16,24], index: 3, kind: input, shape index: {}]   ;;  %s1027_s4 = inlined_call_operand.vmem [shape: f32[24,128], index: 4, kind: input, shape index: {}]   ;;  %s1028_s5 = inlined_call_operand.vmem [shape: f32[1,128], index: 5, kind: input, shape index: {}]   ;;  %s1029_s6 = inlined_call_operand.hbm [shape: f32[2,1,128], index: 6, kind: output, shape index: {}]  }
   0x1   :  { %13 = vsyncpa [#allocation3 + $0x1], 0  ;;  %s838_s21 = smov 0   ;;  %s840_s22 = smov 0  }
   0x2   :  { %s842_s23 = smov 0   ;;  %s844_s24 = smov 0  }
   0x3 LB: > { %s859_s25 = sadd.s32 4294967295, %s794_s24   ;;  %s560_s26 = sadd.s32 4294967294, %s794_s24   ;;  %s794_s24 = sphi %s844_s24, %s1035_s24   ;;  %s790_s23 = sphi %s842_s23, %s1034_s23   ;;  %s786_s22 = sphi %s840_s22, %s1033_s22   ;;  %s782_s21 = sphi %s838_s21, %s1032_s21  }
   0x4   : > { %s863_s27 = sadd.s32 1, %s794_s24   ;;  %s157_s28 = sadd.s32 1, %s790_s23 }
   0x5   : > { %s154_s29 = ssub.s32 %s794_s24, %s863_s27  ;;  %p167_p0 = scmp.ne.s32.totalorder %s790_s23, %s786_s22 }
   0x6   : > { %p155_p1 = scmp.eq.s32.totalorder %s154_s29, 0  ;;  %p168_p2 = scmp.eq.s32.totalorder %s859_s25, 1 }
   0x7   : > { %p173_p3 = scmp.ne.s32.totalorder %s786_s22, %s782_s21  ;;  %p174_p4 = scmp.eq.s32.totalorder %s560_s26, 1 }
   0x8   : > { %s874_s30 = scalar_select %p155_p1, %s790_s23, %s157_s28  }
   0x9   : > { %p876_p5 = por %p168_p2, %p167_p0  ;;  %p880_p6 = por %p174_p4, %p173_p3 }
   0xa   : > { %p563_p7 = scmp.ge.s32.totalorder %s794_s24, 1  ;;  %p215_p8 = scmp.lt.s32.totalorder %s794_s24, 3 }
   0xc   : > { %p216_p9 = pnand %p563_p7, %p215_p8 }
   0xd   : > { %p244_p10 = scmp.lt.s32.totalorder (!%p216_p9), %s859_s25, 1  ;;  %v252_v0 = vld [vmem:[%s1024_s1] sm:$0xff] (!%p216_p9)  ;;  %v253_v1 = vld [vmem:[%s1024_s1 + $0x8] sm:$0xff] (!%p216_p9)  ;;  %v254_v2 = vld [vmem:[%s1024_s1 + $0x10] sm:$0xff] (!%p216_p9)  ;;  %vm271_vm0 = vcmask (!%p216_p9), 1046528   ;;  %vm283_vm1 = vcmask (!%p216_p9), 1045504  }
   0xe   : > { %219 = sbr.rel (%p216_p9) target bundleno = 618 (0x26a), region = 44  ;;  %v255_v3 = vld [vmem:[%s1024_s1 + $0x18] sm:$0xff] (!%p216_p9)  ;;  %v636_v4 = vpack.c.bf16 (!%p216_p9), %v253_v1, %v252_v0  ;;  %v256_v6 = vld [vmem:[%s1024_s1 + $0x20] sm:$0xff] (!%p216_p9)  ;;  %v257_v7 = vld [vmem:[%s1024_s1 + $0x28] sm:$0xff] (!%p216_p9)  ;;  %vm295_vm2 = vcmask (!%p216_p9), 1044480   ;;  %s796_s19 = smov (!%p216_p9), 32  }
   0xf   : > { %v640_v5 = vpack.c.bf16 (!%p216_p9), %v255_v3, %v254_v2  ;;  %v644_v8 = vpack.c.bf16 (!%p216_p9), %v257_v7, %v256_v6  ;;  %v258_v9 = vld [vmem:[%s1024_s1 + $0x30] sm:$0xff] (!%p216_p9)  ;;  %v259_v10 = vld [vmem:[%s1024_s1 + $0x38] sm:$0xff] (!%p216_p9)  ;;  %v260_v30 = vld [vmem:[%s1024_s1 + $0x40] sm:$0xff] (!%p216_p9)  ;;  %s797_s20 = smov (!%p216_p9), 96   ;;  %vm307_vm3 = vcmask (!%p216_p9), 261120   ;;  %vm310_vm4 = vcmask (!%p216_p9), 523264  }
  0x10   : > { %637 = vmatprep.subr.bf16.mxu0 (!%p216_p9), %v636_v4  ;;  %v648_v25 = vpack.c.bf16 (!%p216_p9), %v259_v10, %v258_v9  ;;  %v261_v31 = vld [vmem:[%s1024_s1 + $0x48] sm:$0xff] (!%p216_p9)  ;;  %v262_v36 = vld [vmem:[%s1024_s1 + $0x50] sm:$0xff] (!%p216_p9)  ;;  %v263_v37 = vld [vmem:[%s1024_s1 + $0x58] sm:$0xff] (!%p216_p9)  ;;  %vm313_vm5 = vcmask (!%p216_p9), 785408   ;;  %v799_v62 = vmov (!%p216_p9), 0.0|0.0   ;;  %vm800_vm6 = vmmov (!%p216_p9), 0  }
  0x11   : > { %639 = vmatpush3.bf16.msra.mxu0 (!%p216_p9), %v636_v4  ;;  %v652_v35 = vpack.c.bf16 (!%p216_p9), %v261_v31, %v260_v30  ;;  %v656_v38 = vpack.c.bf16 (!%p216_p9), %v263_v37, %v262_v36  ;;  %v264_v39 = vld [vmem:[%s1024_s1 + $0x60] sm:$0xff] (!%p216_p9)  ;;  %v265_v40 = vld [vmem:[%s1024_s1 + $0x68] sm:$0xff] (!%p216_p9)  ;;  %v266_v42 = vld [vmem:[%s1024_s1 + $0x70] sm:$0xff] (!%p216_p9)  ;;  %668 = vmatprep.subr.bf16.mxu1 (!%p216_p9), %v799_v62  ;;  %v801_v0 = vmov (!%p216_p9), 0.0   ;;  %vm404_vm7 = vcmask (!%p216_p9), 195584   ;;  %s242_s16 = sand.u32 (!%p216_p9), 1, %s786_s22  }
  0x12   : > { %641 = vmatprep.subr.bf16.mxu0 (!%p216_p9), %v640_v5  ;;  %v660_v41 = vpack.c.bf16 (!%p216_p9), %v265_v40, %v264_v39  ;;  %v267_v43 = vld [vmem:[%s1024_s1 + $0x78] sm:$0xff] (!%p216_p9)  ;;  %v414_v60 = vld [vmem:[%s1027_s4] sm:$0xff] (!%p216_p9)  ;;  %v415_v61 = vld [vmem:[%s1027_s4 + $0x8] sm:$0xff] (!%p216_p9)  ;;  %633 = vmatprep.mubr.msk.f32.mxu1 (!%p216_p9), %vm800_vm6, %v801_v0 }
  0x13   : > { %v664_v44 = vpack.c.bf16 (!%p216_p9), %v267_v43, %v266_v42  ;;  %v669_v63 = vpack.c.bf16 (!%p216_p9), %v415_v61, %v414_v60  ;;  %v416_v1 = vld [vmem:[%s1027_s4 + $0x10] sm:$0xff] (!%p216_p9)  ;;  %v565_v2 = vld [vmem:[%s1025_s2] ss:$0 sm:$0xff] (!%p216_p9)  ;;  %v401_v6 = vld [vmem:[%s1026_s3 + $0x8] sm:$0xff] (!%p216_p9) }
  0x14   : > { %v400_v9 = vld [vmem:[%s1026_s3] sm:$0xff] (!%p216_p9) }
  0x15   : > { %s245_s17 = scalar_select %p244_p10, %s859_s25, 1  ;;  %643 = vmatpush3.bf16.msra.mxu0 %v640_v5  ;;  %670 = vmatpush3.bf16.msra.mxu1 %v669_v63 }
  0x16   : > { %645 = vmatprep.subr.bf16.mxu0 %v644_v8  ;;  %631 = vmatprep.subr.mxu1 %v801_v0 }
  0x17   : > { %s671_s28 = smul.u32 24, %s245_s17 }
  0x19   : > { %s248_s10 = scalar_lea.vmem %s1023_s0, %s671_s28  ;;  %647 = vmatpush3.bf16.msra.mxu0 %v644_v8  ;;  %632 = vmatpush3.msra.mxu1 %v416_v1 }
  0x1a   : > { %v915_v11 = vld [vmem:[%s248_s10] sm:$0xff]  ;;  %v917_v12 = vld [vmem:[%s248_s10 + $0x8] sm:$0xff]  ;;  %v251_v13 = vld [vmem:[%s248_s10 + $0x10] sm:$0xff]  ;;  %649 = vmatprep.subr.bf16.mxu0 %v648_v25  ;;  %s798_s10 = smov 64  }
  0x1b   : > { %v272_v14 = vrot.slane %v915_v11, 1  ;;  %v273_v15 = vrot.slane %v917_v12, 1  ;;  %v275_v16 = vrot.slane %v251_v13, 1  ;;  %v284_v17 = vrot.slane %v915_v11, 2 }
  0x1c   : > { %v285_v18 = vrot.slane %v917_v12, 2  ;;  %v287_v19 = vrot.slane %v251_v13, 2  ;;  %v296_v20 = vrot.slane %v915_v11, 3  ;;  %v297_v21 = vrot.slane %v917_v12, 3 }
  0x1d   : > { %v274_v22 = vsel %vm271_vm0, %v272_v14, %v273_v15  ;;  %v276_v23 = vsel %vm271_vm0, %v273_v15, %v275_v16  ;;  %v299_v24 = vrot.slane %v251_v13, 3  ;;  %651 = vmatpush3.bf16.msra.mxu0 %v648_v25 }
  0x1e   : > { %v717_v26 = vpack.i.bf16 %v276_v23, %v274_v22  ;;  %v286_v27 = vsel %vm283_vm1, %v284_v17, %v285_v18  ;;  %v288_v28 = vsel %vm283_vm1, %v285_v18, %v287_v19  ;;  %v298_v29 = vsel %vm295_vm2, %v296_v20, %v297_v21  ;;  %653 = vmatprep.subr.bf16.mxu0 %v652_v35  ;;  %v417_v22 = vld [vmem:[%s1028_s5] sm:$0x1] }
  0x1f   : > { %v300_v32 = vsel %vm295_vm2, %v297_v21, %v299_v24  ;;  %v722_v33 = vpack.i.bf16 %v288_v28, %v286_v27 }
  0x20   : > { %718 = vrot.lane.b32.xlu0 %v717_v26, %s796_s19  ;;  %v727_v34 = vpack.i.bf16 %v300_v32, %v298_v29  ;;  %s567_s19 = sshll.u32 %s859_s25, 4  ;;  %s802_s25 = smov [#allocation2]  }
  0x21   : > { %655 = vmatpush3.bf16.msra.mxu0 %v652_v35  ;;  %s981_s9 = scalar_lea.hbm %s1029_s6, %s567_s19  ;;  %s736_s12 = sshll.u32 %s802_s25, 4  ;;  %s737_s12 = int_to_ptr.vmem [resolvable:$false] %s736_s12 }
  0x22   : > { %728 = vrot.lane.b32.xlu1 %v727_v34, %s797_s20  ;;  %657 = vmatprep.subr.bf16.mxu0 %v656_v38  ;;  %s243_s20 = scalar_lea.vmem [#allocation2], %s242_s16  ;;  %s738_s13 = scalar_lea.vmem %s737_s12, 32 }
  0x23   : > { %s505_s26 = sshll.u32 %s243_s20, 4  ;;  %s983_s26 = int_to_ptr.vmem [resolvable:$true] %s505_s26 }
  0x24   : > { %723 = vrot.lane.b32.xlu0 %v722_v33, %s798_s10  ;;  %s493_s10 = scalar_lea.sflag [#allocation3], %s242_s16  ;;  %s732_s11 = scalar_lea.vmem %s983_s26, 16 }
  0x25   : > { %659 = vmatpush3.bf16.msra.mxu0 %v656_v38  ;;  %p733_p11 = scmp.ne.s32.totalorder %s983_s26, %s732_s11  ;;  %p739_p0 = scmp.lt.s32.totalorder %s983_s26, %s737_s12 }
  0x26   : > { %661 = vmatprep.subr.bf16.mxu0 %v660_v41  ;;  %p740_p1 = scmp.lt.s32.totalorder %s738_s13, %s732_s11 }
  0x27   : > { %p734_p12 = pnand %p733_p11, %p876_p5 }
  0x28   : > { %p741_p2 = por %p740_p1, %p739_p0 }
  0x29   : > { %663 = vmatpush3.bf16.msra.mxu0 %v660_v41  ;;  %p735_p13 = pneg %p734_p12 }
  0x2a   : > { %665 = vmatprep.subr.bf16.mxu0 %v664_v44 }
  0x2b   : > { %p742_p3 = pnand %p741_p2, %p735_p13 }
  0x2d   : > { %667 = vmatpush3.bf16.msra.mxu0 %v664_v44 }
  0x92   : > { %v719_v45 = vpop.permute.xlu0 %718 }
  0x93   : > { %v721_v46 = vunpack.i.h.bf16 %v719_v45  ;;  %v720_v47 = vunpack.i.l.bf16 %v719_v45 }
  0x94   : > { %v729_v48 = vpop.permute.xlu1 %728 }
  0x95   : > { %v731_v50 = vunpack.i.h.bf16 %v729_v48  ;;  %v730_v51 = vunpack.i.l.bf16 %v729_v48  ;;  %v308_v54 = vsel %vm307_vm3, %v915_v11, %v720_v47  ;;  %v309_v55 = vsel %vm307_vm3, %v917_v12, %v721_v46 }
  0x96   : > { %v724_v49 = vpop.permute.xlu0 %723 }
  0x97   : > { %v726_v52 = vunpack.i.h.bf16 %v724_v49  ;;  %v725_v53 = vunpack.i.l.bf16 %v724_v49 }
  0x99   : > { %v311_v56 = vsel %vm310_vm4, %v308_v54, %v725_v53  ;;  %v312_v57 = vsel %vm310_vm4, %v309_v55, %v726_v52 }
  0x9a   : > { %v314_v58 = vsel %vm313_vm5, %v311_v56, %v730_v51  ;;  %v315_v59 = vsel %vm313_vm5, %v312_v57, %v731_v50 }
  0x9b   : > { %624 = vmatprep.mubr.f32.mxu0 %v314_v58 }
  0x9c   : > { %625 = vmatmul.mubr.f32.vlgmr.msra.gmra.mrb[0].mxu0 %v315_v59 }
 0x16f   : > { %v626_v3 = vpop.f32.mrb[0].mxu0 }
 0x170   : > { %v395_v4 = vadd.f32 %v626_v3, %v565_v2  ;;  %v389_v5 = vpop.f32.mrb[1].mxu0 }
 0x171   : > { %v390_v7 = vadd.f32 %v565_v2, %v389_v5 }
 0x172   : > { %v399_v8 = vmax.f32 %v395_v4, 0.0 }
 0x173   : > { %v398_v10 = vmax.f32 %v390_v7, 0.0 }
 0x174   : > { %v403_v11 = vmul.f32 %v401_v6, %v399_v8 }
 0x175   : > { %v402_v12 = vmul.f32 %v400_v9, %v398_v10 }
 0x176   : > { %v406_v13 = vsel %vm404_vm7, %v403_v11, -inf }
 0x177   : > { %v405_v14 = vsel %vm404_vm7, %v402_v12, -inf }
 0x178   : > { %v407_v15 = vmax.f32 %v405_v14, %v406_v13 }
 0x17a   : > { %v408_v16 = vrot.slane %v407_v15, 4 }
 0x17c   : > { %v409_v17 = vmax.f32 %v407_v15, %v408_v16 }
 0x17e   : > { %v410_v18 = vrot.slane %v409_v17, 2 }
 0x180   : > { %v411_v19 = vmax.f32 %v409_v17, %v410_v18 }
 0x182   : > { %v412_v20 = vrot.slane %v411_v19, 1 }
 0x184   : > { %v413_v21 = vmax.f32 %v411_v19, %v412_v20 }
 0x186   : > { %634 = vmatmul.mubr.msk.f32.vlgmr.msra.gmra.mrb[0].mxu1 %vm404_vm7, %v413_v21 }
 0x259   : > { %v487_v23 = vpop.f32.mrb[0].mxu1 }
 0x25a   : > { %v488_v24 = vadd.f32 %v487_v23, %v417_v22  ;;  %v635_v25 = vpop.f32.mrb[1].mxu1 }
 0x25c   : > { %491 = vst [vmem:[%s243_s20] sm:$0x1] %v488_v24 }
 0x25d   : > { %745 = shalt.err (!%p742_p3)
}
 0x25e   : > { %s746_s14 = scalar_lea.hbm %s981_s9, 16  ;;  %s750_s17 = scalar_lea.hbm %s1029_s6, 32 }
 0x25f   : > { %p747_p4 = scmp.ne.s32.totalorder %s981_s9, %s746_s14  ;;  %p751_p9 = scmp.lt.u32.totalorder %s981_s9, %s1029_s6 }
 0x260   : > { %p752_p10 = scmp.lt.u32.totalorder %s750_s17, %s746_s14  ;;  %p754_p12 = scmp.lt.u32.totalorder %s746_s14, %s981_s9 }
 0x261   : > { %p748_p7 = pnand %p747_p4, %p876_p5 }
 0x262   : > { %p753_p11 = por %p752_p10, %p751_p9 }
 0x263   : > { %p749_p8 = pneg %p748_p7 }
 0x264   : > { %p755_p13 = por %p754_p12, %p753_p11 }
 0x266   : > { %p756_p0 = pnand %p755_p13, %p749_p8 }
 0x268   : > { %759 = shalt.err (!%p756_p0)
}
 0x269   : > { %672 = dma.vmem_to_hbm [thread:$0]  (%p876_p5), %s983_s26, 16, %s981_s9, %s493_s10  }
 0x26a PF: > { %p678_p1 = scmp.ge.s32.totalorder %s794_s24, 2  ;;  %s517_s20 = sand.u32 1, %s782_s21  }
 0x26b   : > { %s518_s28 = scalar_lea.sflag [#allocation3], %s517_s20 }
 0x26c   : > { %p675_p2 = pnand %p678_p1, %p880_p6 }
 0x26e   : > { %777 = dma.done.wait (!%p675_p2), %s518_s28, 16  }
 0x26f   : > { %779 = vsyncadd (!%p675_p2), %s518_s28, 4294967280  ;;  %p16_p3 = scmp.ge.s32.totalorder %s863_s27, 4   ;;  %s1032_s21 = smov %s786_s22 }
 0x270   : > { %s1033_s22 = smov %s790_s23  ;;  %s1034_s23 = smov %s874_s30 }
 0x271   : > { %s1035_s24 = smov %s863_s27  ;;  %18 = sbr.rel (!%p16_p3) target bundleno = 3 (0x3), region = 79 }
 0x278   :  { %522 = vsyncpa [#allocation3], 1 }
 0x279   :  { %524 = vsyncpa [#allocation3 + $0x1], 1 }

</bundles_post_ra>
